<compile_context>
chip_gen: v7x
topology: tpu7x:2x2x1
jax: 0.10.0
libtpu: 0.0.40
codegen_flags: <defaults>
</compile_context>

<pallas_src>
import functools

import jax
import jax.numpy as jnp
from jax.experimental import pallas as pl
from jax.experimental.pallas import tpu as pltpu

_LANE = 128      # lane width: pad weight output-feature axes to multiples of this
_SUBLANE = 8     # f32 sublane count: the batch tile is a multiple of this


def _round_up(n: int, m: int) -> int:
    return ((n + m - 1) // m) * m


def _fused_mlp_kernel(*refs, num_layers: int):
    """refs = (x_ref, w0_ref, b0_ref, w1_ref, b1_ref, ..., o_ref).

    One batch tile per grid step.  Weights are bf16 (padded, VMEM-resident across
    the whole grid); the running activation is cast to bf16 only for the MXU, the
    accumulator / bias / ReLU stay f32.  With TM <= 128 and hidden widths padded to
    a small multiple of 128 the live activation is well under a few hundred KiB, so
    it rides in vregs/VMEM without explicit staging.
    # TODO(synk): for much wider hidden layers, stage `h` through a
    # pltpu.VMEM((TM, max_hidden_pad), f32) scratch and tile the per-layer N axis.
    """
    x_ref = refs[0]
    o_ref = refs[-1]

    h = x_ref[...]                                            # f32 [TM, in_f]
    for i in range(num_layers):
        w_ref = refs[1 + 2 * i]                               # bf16 [K_i, N_i_pad]
        b_ref = refs[2 + 2 * i]                               # f32  [1,   N_i_pad]
        y = jnp.dot(h.astype(jnp.bfloat16), w_ref[...],
                    preferred_element_type=jnp.float32)       # MXU bf16, f32 acc
        y = y + b_ref[...]                                    # f32 bias broadcast
        if i < num_layers - 1:
            y = jnp.maximum(y, 0.0)                           # ReLU on hidden layers
        h = y

    o_ref[...] = h.astype(o_ref.dtype)                        # lane-dense store


def pallas_fused_mlp(x, padded_params, output_size: int):
    """Run the whole MLP as a single Pallas kernel with a parallel batch grid.

    x             : [batch, in_features] f32 (unpadded)
    padded_params : list of (W bf16 [K_i, N_i_pad], b f32 [1, N_i_pad]); layer 0's
                    K equals the logical input width, later K's equal the previous
                    layer's padded width (zero rows on padded lanes).
    output_size   : logical number of output features (for the final feature slice).
    """
    batch, in_f = x.shape
    num_layers = len(padded_params)
    out_pad = padded_params[-1][0].shape[1]

    # M tile: multiple of 8 sublanes, capped at 128 (bump to 256 on v6e/v7x for
    # MXU-filling tiles once batch is large; 128 keeps v5e's 4x128x128 MXU full).
    tm = min(128, _round_up(max(batch, 1), _SUBLANE))
    num_tiles = pl.cdiv(batch, tm)
    batch_pad = num_tiles * tm

    # Pad the batch axis only when it is not already a multiple of the tile;
    # the feature axis of x is never padded.
    x_in = x
    if batch_pad != batch:
        x_in = jnp.zeros((batch_pad, in_f), x.dtype).at[:batch].set(x)

    kernel = functools.partial(_fused_mlp_kernel, num_layers=num_layers)

    in_specs = [pl.BlockSpec((tm, in_f), lambda i: (i, 0))]    # streamed per tile
    flat_args = [x_in]
    weight_bytes = 0
    flops = 0
    for w, b in padded_params:
        in_specs.append(pl.BlockSpec(w.shape, lambda i: (0, 0)))   # resident weights
        in_specs.append(pl.BlockSpec(b.shape, lambda i: (0, 0)))   # resident biases
        flat_args.append(w)
        flat_args.append(b)
        weight_bytes += w.size * w.dtype.itemsize + b.size * b.dtype.itemsize
        flops += 2 * batch_pad * w.shape[0] * w.shape[1]

    x_bytes = batch_pad * in_f * x.dtype.itemsize
    out_bytes = batch_pad * out_pad * x.dtype.itemsize
    cost = pl.CostEstimate(flops=flops, transcendentals=0,
                           bytes_accessed=x_bytes + out_bytes + weight_bytes)

    # VMEM budget: resident weights/biases + double-buffered x/out tiles + the f32
    # activation chain, with 2x headroom; clamp to v7x's 64 MiB physical VMEM.
    max_width = max(w.shape[1] for w, _ in padded_params)
    tile_bytes = 2 * (tm * in_f * 4 + tm * out_pad * 4) + 2 * tm * max_width * 4
    vmem_limit = int(min(max(2 * (weight_bytes + tile_bytes), 16 * 1024 * 1024),
                         64 * 1024 * 1024))

    out = pl.pallas_call(
        kernel,
        out_shape=jax.ShapeDtypeStruct((batch_pad, out_pad), x.dtype),
        grid=(num_tiles,),
        in_specs=in_specs,
        out_specs=pl.BlockSpec((tm, out_pad), lambda i: (i, 0)),
        compiler_params=pltpu.CompilerParams(
            dimension_semantics=("parallel",),
            vmem_limit_bytes=vmem_limit),
        cost_estimate=cost,
    )(*flat_args)

    out = out[:, :output_size]          # feature slice off the lane-dense pad
    if batch_pad != batch:
        out = out[:batch]               # only when the batch axis was padded
    return out


class MLPPallas:
    """JAX/Pallas equivalent of the PyTorch MLP module (single fused kernel)."""

    def __init__(self, input_size, output_size, hidden_layers, key):
        if len(hidden_layers) > 5:
            raise ValueError("The number of hidden layers cannot exceed 5.")
        self.output_size = output_size

        sizes = [input_size] + list(hidden_layers) + [output_size]
        self.params = []         # logical f32 (W[in,out], b[out]) for the reference
        self.padded_params = []  # (W bf16 [K, N_pad], b f32 [1, N_pad]) for the kernel

        prev_pad = input_size    # layer 0 input kept at its logical width (no x pad)
        for i in range(len(sizes) - 1):
            fan_in, fan_out = sizes[i], sizes[i + 1]
            key, kw, kb = jax.random.split(key, 3)
            # Deterministic init (similar scale to torch's default uniform init).
            bound = 1.0 / float(fan_in) ** 0.5
            w = jax.random.uniform(kw, (fan_in, fan_out), jnp.float32, -bound, bound)
            b = jax.random.uniform(kb, (fan_out,), jnp.float32, -bound, bound)
            self.params.append((w, b))

            out_p = _round_up(fan_out, _LANE)
            # This layer's input width = previous layer's padded output width
            # (zero rows for the padded lanes), so the activation chain never
            # needs wrapper-side feature padding.
            w_pad = jnp.zeros((prev_pad, out_p), jnp.float32).at[:fan_in, :fan_out].set(w)
            w_pad = w_pad.astype(jnp.bfloat16)   # bf16 MXU operand; f32 accumulate in-kernel
            b_pad = jnp.zeros((1, out_p), jnp.float32).at[0, :fan_out].set(b)
            self.padded_params.append((w_pad, b_pad))
            prev_pad = out_p

    def __call__(self, x):
        return pallas_fused_mlp(x, self.padded_params, self.output_size)


def mlp_reference(x, params):
    """Pure-JAX reference mimicking the kernel's bf16-operand / f32-accumulate math."""
    h = x
    n = len(params)
    for i, (w, b) in enumerate(params):
        y = jnp.dot(h.astype(jnp.bfloat16), w.astype(jnp.bfloat16),
                    preferred_element_type=jnp.float32) + b
        if i < n - 1:
            y = jnp.maximum(y, 0.0)
        h = y
    return h


if __name__ == "__main__":
    key = jax.random.PRNGKey(0)
    key, kx, kp = jax.random.split(key, 3)

    batch = 256                   # multiple of the M tile -> no batch padding,
                                  # 2 grid tiles (keeps both v7x TensorCores busy)
    input_size = 16
    hidden_layers = [32, 64, 32]
    output_size = 8

    x = jax.random.normal(kx, (batch, input_size), jnp.float32)
    model = MLPPallas(input_size, output_size, hidden_layers, kp)

    out = jax.block_until_ready(model(x))
    ref = mlp_reference(x, model.params)

    assert out.shape == (batch, output_size)
    assert jnp.allclose(out, ref, atol=5e-3, rtol=5e-3), "mismatch vs reference"

    print("KERNEL_OK")
</pallas_src>

<mosaic_0001>
module attributes {stable_mosaic.version = 11 : i64} {
  func.func @_fused_mlp_kernel(%arg0: i32, %arg1: memref<128x16xf32, #tpu.memory_space<vmem>>, %arg2: memref<16x128xbf16, #tpu.memory_space<vmem>>, %arg3: memref<1x128xf32, #tpu.memory_space<vmem>>, %arg4: memref<128x128xbf16, #tpu.memory_space<vmem>>, %arg5: memref<1x128xf32, #tpu.memory_space<vmem>>, %arg6: memref<128x128xbf16, #tpu.memory_space<vmem>>, %arg7: memref<1x128xf32, #tpu.memory_space<vmem>>, %arg8: memref<128x128xbf16, #tpu.memory_space<vmem>>, %arg9: memref<1x128xf32, #tpu.memory_space<vmem>>, %arg10: memref<128x128xf32, #tpu.memory_space<vmem>>) attributes {dimension_semantics = [#tpu.dimension_semantics<parallel>], iteration_bounds = array<i64: 2>, scalar_prefetch = 0 : i64, scratch_operands = 0 : i64, tpu.core_type = #tpu.core_type<tc>, window_params = [{transform_indices = @transform_0, window_bounds = array<i64: 128, 16>}, {pipeline_mode = #tpu.pipeline_mode<synchronous>, transform_indices = @transform_1, window_bounds = array<i64: 16, 128>}, {pipeline_mode = #tpu.pipeline_mode<synchronous>, transform_indices = @transform_2, window_bounds = array<i64: 1, 128>}, {pipeline_mode = #tpu.pipeline_mode<synchronous>, transform_indices = @transform_3, window_bounds = array<i64: 128, 128>}, {pipeline_mode = #tpu.pipeline_mode<synchronous>, transform_indices = @transform_4, window_bounds = array<i64: 1, 128>}, {pipeline_mode = #tpu.pipeline_mode<synchronous>, transform_indices = @transform_5, window_bounds = array<i64: 128, 128>}, {pipeline_mode = #tpu.pipeline_mode<synchronous>, transform_indices = @transform_6, window_bounds = array<i64: 1, 128>}, {pipeline_mode = #tpu.pipeline_mode<synchronous>, transform_indices = @transform_7, window_bounds = array<i64: 128, 128>}, {pipeline_mode = #tpu.pipeline_mode<synchronous>, transform_indices = @transform_8, window_bounds = array<i64: 1, 128>}, {transform_indices = @transform_9, window_bounds = array<i64: 128, 128>}]} {
    %c0 = arith.constant 0 : index
    %c0_0 = arith.constant 0 : index
    %0 = vector.load %arg1[%c0, %c0_0] : memref<128x16xf32, #tpu.memory_space<vmem>>, vector<128x16xf32>
    %1 = arith.truncf %0 : vector<128x16xf32> to vector<128x16xbf16>
    %c0_1 = arith.constant 0 : index
    %c0_2 = arith.constant 0 : index
    %2 = vector.load %arg2[%c0_1, %c0_2] : memref<16x128xbf16, #tpu.memory_space<vmem>>, vector<16x128xbf16>
    %cst = arith.constant dense<0.000000e+00> : vector<128x128xf32>
    %3 = tpu.matmul %1, %2, %cst {dimension_numbers = #tpu.dot_dimension_numbers<[1], [0], [0], [1], [0, 0, 1, 1], [], []>} : vector<128x16xbf16>, vector<16x128xbf16>, vector<128x128xf32> -> vector<128x128xf32>
    %c0_3 = arith.constant 0 : index
    %c0_4 = arith.constant 0 : index
    %4 = vector.load %arg3[%c0_3, %c0_4] : memref<1x128xf32, #tpu.memory_space<vmem>>, vector<1x128xf32>
    %5 = vector.broadcast %4 : vector<1x128xf32> to vector<128x128xf32>
    %6 = arith.addf %3, %5 : vector<128x128xf32>
    %cst_5 = arith.constant 0.000000e+00 : f32
    %7 = vector.broadcast %cst_5 : f32 to vector<128x128xf32>
    %8 = arith.maximumf %6, %7 : vector<128x128xf32>
    %9 = arith.truncf %8 : vector<128x128xf32> to vector<128x128xbf16>
    %c0_6 = arith.constant 0 : index
    %c0_7 = arith.constant 0 : index
    %10 = vector.load %arg4[%c0_6, %c0_7] : memref<128x128xbf16, #tpu.memory_space<vmem>>, vector<128x128xbf16>
    %cst_8 = arith.constant dense<0.000000e+00> : vector<128x128xf32>
    %11 = tpu.matmul %9, %10, %cst_8 {dimension_numbers = #tpu.dot_dimension_numbers<[1], [0], [0], [1], [0, 0, 1, 1], [], []>} : vector<128x128xbf16>, vector<128x128xbf16>, vector<128x128xf32> -> vector<128x128xf32>
    %c0_9 = arith.constant 0 : index
    %c0_10 = arith.constant 0 : index
    %12 = vector.load %arg5[%c0_9, %c0_10] : memref<1x128xf32, #tpu.memory_space<vmem>>, vector<1x128xf32>
    %13 = vector.broadcast %12 : vector<1x128xf32> to vector<128x128xf32>
    %14 = arith.addf %11, %13 : vector<128x128xf32>
    %cst_11 = arith.constant 0.000000e+00 : f32
    %15 = vector.broadcast %cst_11 : f32 to vector<128x128xf32>
    %16 = arith.maximumf %14, %15 : vector<128x128xf32>
    %17 = arith.truncf %16 : vector<128x128xf32> to vector<128x128xbf16>
    %c0_12 = arith.constant 0 : index
    %c0_13 = arith.constant 0 : index
    %18 = vector.load %arg6[%c0_12, %c0_13] : memref<128x128xbf16, #tpu.memory_space<vmem>>, vector<128x128xbf16>
    %cst_14 = arith.constant dense<0.000000e+00> : vector<128x128xf32>
    %19 = tpu.matmul %17, %18, %cst_14 {dimension_numbers = #tpu.dot_dimension_numbers<[1], [0], [0], [1], [0, 0, 1, 1], [], []>} : vector<128x128xbf16>, vector<128x128xbf16>, vector<128x128xf32> -> vector<128x128xf32>
    %c0_15 = arith.constant 0 : index
    %c0_16 = arith.constant 0 : index
    %20 = vector.load %arg7[%c0_15, %c0_16] : memref<1x128xf32, #tpu.memory_space<vmem>>, vector<1x128xf32>
    %21 = vector.broadcast %20 : vector<1x128xf32> to vector<128x128xf32>
    %22 = arith.addf %19, %21 : vector<128x128xf32>
    %cst_17 = arith.constant 0.000000e+00 : f32
    %23 = vector.broadcast %cst_17 : f32 to vector<128x128xf32>
    %24 = arith.maximumf %22, %23 : vector<128x128xf32>
    %25 = arith.truncf %24 : vector<128x128xf32> to vector<128x128xbf16>
    %c0_18 = arith.constant 0 : index
    %c0_19 = arith.constant 0 : index
    %26 = vector.load %arg8[%c0_18, %c0_19] : memref<128x128xbf16, #tpu.memory_space<vmem>>, vector<128x128xbf16>
    %cst_20 = arith.constant dense<0.000000e+00> : vector<128x128xf32>
    %27 = tpu.matmul %25, %26, %cst_20 {dimension_numbers = #tpu.dot_dimension_numbers<[1], [0], [0], [1], [0, 0, 1, 1], [], []>} : vector<128x128xbf16>, vector<128x128xbf16>, vector<128x128xf32> -> vector<128x128xf32>
    %c0_21 = arith.constant 0 : index
    %c0_22 = arith.constant 0 : index
    %28 = vector.load %arg9[%c0_21, %c0_22] : memref<1x128xf32, #tpu.memory_space<vmem>>, vector<1x128xf32>
    %29 = vector.broadcast %28 : vector<1x128xf32> to vector<128x128xf32>
    %30 = arith.addf %27, %29 : vector<128x128xf32>
    %c0_23 = arith.constant 0 : index
    %c0_24 = arith.constant 0 : index
    %31 = vector.load %arg10[%c0_23, %c0_24] : memref<128x128xf32, #tpu.memory_space<vmem>>, vector<128x128xf32>
    tpu.vector_store %arg10[%c0_23, %c0_24], %30 {strides = array<i32>} : memref<128x128xf32, #tpu.memory_space<vmem>>, vector<128x128xf32>,
    return
  }
  func.func @transform_0(%arg0: i32) -> (i32, i32) {
    %c0_i32 = arith.constant 0 : i32
    %c0_i32_0 = arith.constant 0 : i32
    return %arg0, %c0_i32 : i32, i32
  }
  func.func @transform_1(%arg0: i32) -> (i32, i32) {
    %c0_i32 = arith.constant 0 : i32
    %c0_i32_0 = arith.constant 0 : i32
    %c0_i32_1 = arith.constant 0 : i32
    return %c0_i32, %c0_i32_0 : i32, i32
  }
  func.func @transform_2(%arg0: i32) -> (i32, i32) {
    %c0_i32 = arith.constant 0 : i32
    %c0_i32_0 = arith.constant 0 : i32
    %c0_i32_1 = arith.constant 0 : i32
    return %c0_i32, %c0_i32_0 : i32, i32
  }
  func.func @transform_3(%arg0: i32) -> (i32, i32) {
    %c0_i32 = arith.constant 0 : i32
    %c0_i32_0 = arith.constant 0 : i32
    %c0_i32_1 = arith.constant 0 : i32
    return %c0_i32, %c0_i32_0 : i32, i32
  }
  func.func @transform_4(%arg0: i32) -> (i32, i32) {
    %c0_i32 = arith.constant 0 : i32
    %c0_i32_0 = arith.constant 0 : i32
    %c0_i32_1 = arith.constant 0 : i32
    return %c0_i32, %c0_i32_0 : i32, i32
  }
  func.func @transform_5(%arg0: i32) -> (i32, i32) {
    %c0_i32 = arith.constant 0 : i32
    %c0_i32_0 = arith.constant 0 : i32
    %c0_i32_1 = arith.constant 0 : i32
    return %c0_i32, %c0_i32_0 : i32, i32
  }
  func.func @transform_6(%arg0: i32) -> (i32, i32) {
    %c0_i32 = arith.constant 0 : i32
    %c0_i32_0 = arith.constant 0 : i32
    %c0_i32_1 = arith.constant 0 : i32
    return %c0_i32, %c0_i32_0 : i32, i32
  }
  func.func @transform_7(%arg0: i32) -> (i32, i32) {
    %c0_i32 = arith.constant 0 : i32
    %c0_i32_0 = arith.constant 0 : i32
    %c0_i32_1 = arith.constant 0 : i32
    return %c0_i32, %c0_i32_0 : i32, i32
  }
  func.func @transform_8(%arg0: i32) -> (i32, i32) {
    %c0_i32 = arith.constant 0 : i32
    %c0_i32_0 = arith.constant 0 : i32
    %c0_i32_1 = arith.constant 0 : i32
    return %c0_i32, %c0_i32_0 : i32, i32
  }
  func.func @transform_9(%arg0: i32) -> (i32, i32) {
    %c0_i32 = arith.constant 0 : i32
    %c0_i32_0 = arith.constant 0 : i32
    return %arg0, %c0_i32 : i32, i32
  }
}

</mosaic_0001>

<bundles_post_ra>
// kernel: tpu_custom_call.1
= control target key start
LH: loop header
LB: loop body
LE: loop exit
PB: predicated region body
PF: predicated region fallthrough
CT: control target
= control target key end

     0   :  { %14 = vsyncpa [#allocation3], 0  ;;  %s1858_s0 = inlined_call_operand.vmem [shape: f32[256,16], index: 0, kind: input, shape index: {}]   ;;  %s1859_s1 = inlined_call_operand.vmem [shape: bf16[16,128], index: 1, kind: input, shape index: {}]   ;;  %s1860_s2 = inlined_call_operand.vmem [shape: f32[1,128], index: 2, kind: input, shape index: {}]   ;;  %s1861_s3 = inlined_call_operand.vmem [shape: bf16[128,128], index: 3, kind: input, shape index: {}]   ;;  %s1862_s4 = inlined_call_operand.vmem [shape: f32[1,128], index: 4, kind: input, shape index: {}]   ;;  %s1863_s5 = inlined_call_operand.vmem [shape: bf16[128,128], index: 5, kind: input, shape index: {}]   ;;  %s1864_s6 = inlined_call_operand.vmem [shape: f32[1,128], index: 6, kind: input, shape index: {}]   ;;  %s1865_s7 = inlined_call_operand.vmem [shape: bf16[128,128], index: 7, kind: input, shape index: {}]   ;;  %s1866_s8 = inlined_call_operand.vmem [shape: f32[1,128], index: 8, kind: input, shape index: {}]   ;;  %s1867_s9 = inlined_call_operand.hbm [shape: f32[256,128], index: 9, kind: output, shape index: {}]  }
   0x1   :  { %16 = vsyncpa [#allocation3 + $0x1], 0  ;;  %s1584_s30 = smov 0   ;;  %s1586_s10 = smov 0  }
   0x2   :  { %s1588_s11 = smov 0   ;;  %s1590_s12 = smov 0  }
   0x3 LB: > { %s1605_s13 = sadd.s32 4294967295, %s1529_s12   ;;  %s1164_s14 = sadd.s32 4294967294, %s1529_s12   ;;  %s1529_s12 = sphi %s1590_s12, %s1873_s12   ;;  %s1525_s11 = sphi %s1588_s11, %s1872_s11   ;;  %s1521_s10 = sphi %s1586_s10, %s1871_s10   ;;  %s1517_s30 = sphi %s1584_s30, %s1870_s30  }
   0x4   : > { %s1609_s15 = sadd.s32 1, %s1529_s12   ;;  %s223_s16 = sadd.s32 1, %s1525_s11 }
   0x5   : > { %s220_s17 = ssub.s32 %s1529_s12, %s1609_s15  ;;  %p233_p0 = scmp.ne.s32.totalorder %s1525_s11, %s1521_s10 }
   0x6   : > { %p221_p1 = scmp.eq.s32.totalorder %s220_s17, 0  ;;  %p234_p2 = scmp.eq.s32.totalorder %s1605_s13, 1 }
   0x7   : > { %p239_p3 = scmp.ne.s32.totalorder %s1521_s10, %s1517_s30  ;;  %p240_p4 = scmp.eq.s32.totalorder %s1164_s14, 1 }
   0x8   : > { %s1620_s18 = scalar_select %p221_p1, %s1525_s11, %s223_s16  }
   0x9   : > { %p1622_p5 = por %p234_p2, %p233_p0  ;;  %p1626_p6 = por %p240_p4, %p239_p3 }
   0xa   : > { %p1167_p7 = scmp.ge.s32.totalorder %s1529_s12, 1  ;;  %p291_p8 = scmp.lt.s32.totalorder %s1529_s12, 3 }
   0xc   : > { %p292_p9 = pnand %p1167_p7, %p291_p8 }
   0xd   : > { %v1442_v0 = vld [vmem:[%s1859_s1] sm:$0xff] (!%p292_p9)   ;;  %s1169_s23 = sshll.u32 (!%p292_p9), %s1605_s13, 4  ;;  %v1444_v2 = vld [vmem:[%s1861_s3 + $0x8] sm:$0xff] (!%p292_p9)   ;;  %v1445_v3 = vld [vmem:[%s1861_s3 + $0x10] sm:$0xff] (!%p292_p9)   ;;  %vm374_vm0 = vcmask (!%p292_p9), 130048   ;;  %s1213_s27 = sshll.u32 (!%p292_p9), %s1605_s13, 11 }
   0xe   : > { %295 = sbr.rel (%p292_p9) target bundleno = 950 (0x3b6), region = 56  ;;  %p328_p10 = scmp.lt.s32.totalorder (!%p292_p9), %s1169_s23, 31  ;;  %1271 = vmatprep.subr.bf16.mxu0 (!%p292_p9), %v1442_v0  ;;  %v1443_v1 = vld [vmem:[%s1861_s3] sm:$0xff] (!%p292_p9)   ;;  %v1446_v13 = vld [vmem:[%s1861_s3 + $0x18] sm:$0xff] (!%p292_p9)   ;;  %v1448_v21 = vld [vmem:[%s1861_s3 + $0x28] sm:$0xff] (!%p292_p9)  }
   0xf   : > { %1272 = vmatpush3.bf16.msra.mxu0 (!%p292_p9), %v1442_v0  ;;  %1289 = vmatprep.subr.bf16.mxu1 (!%p292_p9), %v1443_v1  ;;  %v1447_v18 = vld [vmem:[%s1861_s3 + $0x20] sm:$0xff] (!%p292_p9)   ;;  %v1449_v31 = vld [vmem:[%s1861_s3 + $0x30] sm:$0xff] (!%p292_p9)   ;;  %v1450_v32 = vld [vmem:[%s1861_s3 + $0x38] sm:$0xff] (!%p292_p9)   ;;  %s1808_s17 = scalar_lea.hbm (!%p292_p9), %s1867_s9, %s1213_s27  ;;  %s1531_s22 = smov (!%p292_p9), [#allocation2]  }
  0x10   : > { %1290 = vmatpush3.bf16.msra.mxu1 (!%p292_p9), %v1443_v1  ;;  %v1451_v33 = vld [vmem:[%s1863_s5] sm:$0xff] (!%p292_p9)   ;;  %v1452_v34 = vld [vmem:[%s1863_s5 + $0x8] sm:$0xff] (!%p292_p9)   ;;  %v1453_v35 = vld [vmem:[%s1863_s5 + $0x10] sm:$0xff] (!%p292_p9)  }
  0x11   : > { %1291 = vmatprep.subr.bf16.mxu1 (!%p292_p9), %v1444_v2  ;;  %1321 = vmatprep.subr.bf16.mxu0 (!%p292_p9), %v1451_v33  ;;  %v1454_v36 = vld [vmem:[%s1863_s5 + $0x18] sm:$0xff] (!%p292_p9)   ;;  %v1455_v37 = vld [vmem:[%s1863_s5 + $0x20] sm:$0xff] (!%p292_p9)   ;;  %v1456_v38 = vld [vmem:[%s1863_s5 + $0x28] sm:$0xff] (!%p292_p9)  }
  0x12   : > { %v1171_v39 = vld [vmem:[%s1860_s2] ss:$0 sm:$0xff] (!%p292_p9) }
  0x14   : > { %1292 = vmatpush3.bf16.msra.mxu1 (!%p292_p9), %v1444_v2 }
  0x15   : > { %s1875_s23 = smov (!%p328_p10, %s1169_s23), 31  ;;  %1293 = vmatprep.subr.bf16.mxu1 %v1445_v3 }
  0x16   : > { %s1170_s28 = sshll.u32 %s1875_s23, 3 }
  0x17   : > { %s1645_s16 = scalar_lea.vmem %s1858_s0, %s1170_s28 }
  0x18   : > { %v335_v4 = vld [vmem:[%s1645_s16] sm:$0xff]  ;;  %v336_v5 = vld [vmem:[%s1645_s16 + $0x8] sm:$0xff]  ;;  %v337_v6 = vld [vmem:[%s1645_s16 + $0x10] sm:$0xff]  ;;  %1294 = vmatpush3.bf16.msra.mxu1 %v1445_v3 }
  0x19   : > { %v351_v7 = vpack.c.bf16 %v336_v5, %v335_v4  ;;  %v338_v8 = vld [vmem:[%s1645_s16 + $0x18] sm:$0xff]  ;;  %v339_v9 = vld [vmem:[%s1645_s16 + $0x20] sm:$0xff]  ;;  %v340_v10 = vld [vmem:[%s1645_s16 + $0x28] sm:$0xff]  ;;  %1295 = vmatprep.subr.bf16.mxu1 %v1446_v13 }
  0x1a   : > { %v352_v11 = vpack.c.bf16 %v338_v8, %v337_v6  ;;  %v353_v12 = vpack.c.bf16 %v340_v10, %v339_v9  ;;  %v341_v14 = vld [vmem:[%s1645_s16 + $0x30] sm:$0xff]  ;;  %v342_v15 = vld [vmem:[%s1645_s16 + $0x38] sm:$0xff]  ;;  %v343_v16 = vld [vmem:[%s1645_s16 + $0x40] sm:$0xff] }
  0x1b   : > { %1273 = vmatprep.mubr.msk.bf16.mxu0 %vm374_vm0, %v351_v7  ;;  %v344_v17 = vld [vmem:[%s1645_s16 + $0x48] sm:$0xff]  ;;  %v354_v19 = vpack.c.bf16 %v342_v15, %v341_v14  ;;  %v345_v22 = vld [vmem:[%s1645_s16 + $0x50] sm:$0xff]  ;;  %v346_v23 = vld [vmem:[%s1645_s16 + $0x58] sm:$0xff] }
  0x1c   : > { %1274 = vmatmul.mubr.msk.bf16.vlgmr.msra.gmra.mrb[0].mxu0 %vm374_vm0, %v352_v11  ;;  %v355_v20 = vpack.c.bf16 %v344_v17, %v343_v16  ;;  %1296 = vmatpush3.bf16.msra.mxu1 %v1446_v13  ;;  %v347_v24 = vld [vmem:[%s1645_s16 + $0x60] sm:$0xff]  ;;  %v348_v25 = vld [vmem:[%s1645_s16 + $0x68] sm:$0xff]  ;;  %v356_v26 = vpack.c.bf16 %v346_v23, %v345_v22  ;;  %v349_v28 = vld [vmem:[%s1645_s16 + $0x70] sm:$0xff] }
  0x1d   : > { %1277 = vmatprep.mubr.msk.bf16.mxu0 %vm374_vm0, %v353_v12  ;;  %1297 = vmatprep.subr.bf16.mxu1 %v1447_v18  ;;  %v357_v27 = vpack.c.bf16 %v348_v25, %v347_v24  ;;  %v350_v29 = vld [vmem:[%s1645_s16 + $0x78] sm:$0xff]  ;;  %s324_s16 = sand.u32 1, %s1521_s10  }
  0x1e   : > { %v358_v30 = vpack.c.bf16 %v350_v29, %v349_v28  ;;  %1322 = vmatpush3.bf16.msra.mxu0 %v1451_v33  ;;  %v1458_v33 = vld [vmem:[%s1863_s5 + $0x38] sm:$0xff]   ;;  %s1168_s23 = sshll.u32 %s324_s16, 7  ;;  %s1817_s13 = scalar_lea.sflag [#allocation3], %s324_s16 }
  0x1f   : > { %1323 = vmatprep.subr.bf16.mxu0 %v1452_v34  ;;  %s1788_s26 = scalar_lea.vmem [#allocation2], %s1168_s23  ;;  %s1471_s23 = sshll.u32 %s1531_s22, 4  ;;  %s1472_s23 = int_to_ptr.vmem [resolvable:$false] %s1471_s23 }
  0x20   : > { %1298 = vmatpush3.bf16.msra.mxu1 %v1447_v18  ;;  %s1102_s28 = sshll.u32 %s1788_s26, 4  ;;  %s1473_s24 = scalar_lea.vmem %s1472_s23, 4096  ;;  %s1810_s28 = int_to_ptr.vmem [resolvable:$true] %s1102_s28 }
  0x21   : > { %1299 = vmatprep.subr.bf16.mxu1 %v1448_v21  ;;  %s1467_s21 = scalar_lea.vmem %s1810_s28, 2048  ;;  %p1474_p0 = scmp.lt.s32.totalorder %s1810_s28, %s1472_s23 }
  0x22   : > { %1324 = vmatpush3.bf16.msra.mxu0 %v1452_v34  ;;  %v1459_v34 = vld [vmem:[%s1865_s7] sm:$0xff]   ;;  %p1468_p11 = scmp.ne.s32.totalorder %s1810_s28, %s1467_s21  ;;  %p1475_p1 = scmp.lt.s32.totalorder %s1473_s24, %s1467_s21 }
  0x23   : > { %1325 = vmatprep.subr.bf16.mxu0 %v1453_v35 }
  0x24   : > { %1278 = vmatmul.mubr.msk.bf16.gmra.mrb[4].mxu0 %vm374_vm0, %v354_v19  ;;  %1300 = vmatpush3.bf16.msra.mxu1 %v1448_v21  ;;  %p1469_p12 = pnand %p1468_p11, %p1622_p5  ;;  %p1476_p2 = por %p1475_p1, %p1474_p0 }
  0x25   : > { %1281 = vmatprep.mubr.msk.bf16.mxu0 %vm374_vm0, %v355_v20  ;;  %1301 = vmatprep.subr.bf16.mxu1 %v1449_v31 }
  0x26   : > { %1326 = vmatpush3.bf16.msra.mxu0 %v1453_v35  ;;  %v1460_v35 = vld [vmem:[%s1865_s7 + $0x8] sm:$0xff]   ;;  %p1470_p13 = pneg %p1469_p12 }
  0x27   : > { %1327 = vmatprep.subr.bf16.mxu0 %v1454_v36 }
  0x28   : > { %1302 = vmatpush3.bf16.msra.mxu1 %v1449_v31  ;;  %p1477_p3 = pnand %p1476_p2, %p1470_p13 }
  0x29   : > { %1303 = vmatprep.subr.bf16.mxu1 %v1450_v32 }
  0x2a   : > { %1328 = vmatpush3.bf16.msra.mxu0 %v1454_v36  ;;  %v1461_v36 = vld [vmem:[%s1865_s7 + $0x10] sm:$0xff]  }
  0x2b   : > { %1329 = vmatprep.subr.bf16.mxu0 %v1455_v37 }
  0x2c   : > { %1282 = vmatmul.mubr.msk.bf16.gmra.mrb[8].mxu0 %vm374_vm0, %v356_v26  ;;  %1304 = vmatpush3.bf16.msra.mxu1 %v1450_v32  ;;  %v1457_v32 = vld [vmem:[%s1863_s5 + $0x30] sm:$0xff]  }
  0x2d   : > { %1285 = vmatprep.mubr.msk.bf16.mxu0 %vm374_vm0, %v357_v27  ;;  %1385 = vmatprep.subr.bf16.mxu1 %v1459_v34 }
  0x2e   : > { %1330 = vmatpush3.bf16.msra.mxu0 %v1455_v37  ;;  %v1728_v37 = vld [vmem:[%s1865_s7 + $0x18] sm:$0xff]  }
  0x2f   : > { %1331 = vmatprep.subr.bf16.mxu0 %v1456_v38 }
  0x32   : > { %1332 = vmatpush3.bf16.msra.mxu0 %v1456_v38  ;;  %v1734_v38 = vld [vmem:[%s1865_s7 + $0x20] sm:$0xff]  }
  0x33   : > { %1333 = vmatprep.subr.bf16.mxu0 %v1457_v32 }
  0x34   : > { %1286 = vmatmul.mubr.msk.bf16.gmra.mrb[12].mxu0 %vm374_vm0, %v358_v30 }
  0x36   : > { %1334 = vmatpush3.bf16.msra.mxu0 %v1457_v32 }
  0x37   : > { %1335 = vmatprep.subr.bf16.mxu0 %v1458_v33 }
  0x3a   : > { %1336 = vmatpush3.bf16.msra.mxu0 %v1458_v33  ;;  %v1465_v33 = vld [vmem:[%s1865_s7 + $0x30] sm:$0xff]  }
  0x3b   : > { %1353 = vmatprep.subr.bf16.mxu0 %v1459_v34 }
  0xef   : > { %v1275_v40 = vpop.f32.mrb[0].mxu0 }
  0xf0   : > { %v442_v41 = vadd.f32 %v1275_v40, %v1171_v39  ;;  %v433_v42 = vpop.f32.mrb[1].mxu0  ;;  %v1749_v40 = vld [vmem:[%s1862_s4] ss:$0 sm:$0xff] }
  0xf1   : > { %v434_v43 = vadd.f32 %v1171_v39, %v433_v42  ;;  %v1276_v44 = vpop.f32.mrb[2].mxu0 }
  0xf2   : > { %v445_v45 = vadd.f32 %v1276_v44, %v1171_v39  ;;  %v436_v46 = vpop.f32.mrb[3].mxu0  ;;  %v498_v48 = vmax.f32 %v442_v41, 0.0 }
  0xf3   : > { %v437_v47 = vadd.f32 %v1171_v39, %v436_v46  ;;  %v496_v50 = vmax.f32 %v434_v43, 0.0 }
  0xf4   : > { %v499_v49 = vmax.f32 %v445_v45, 0.0 }
  0xf5   : > { %v497_v51 = vmax.f32 %v437_v47, 0.0 }
  0xf6   : > { %v513_v52 = vpack.c.bf16 %v499_v49, %v498_v48 }
  0xf7   : > { %v1279_v53 = vpop.f32.mrb[4].mxu0  ;;  %v512_v54 = vpack.c.bf16 %v497_v51, %v496_v50 }
  0xf8   : > { %v458_v55 = vadd.f32 %v1279_v53, %v1171_v39  ;;  %v449_v56 = vpop.f32.mrb[5].mxu0 }
  0xf9   : > { %v450_v57 = vadd.f32 %v1171_v39, %v449_v56  ;;  %v1280_v58 = vpop.f32.mrb[6].mxu0  ;;  %1305 = vmatprep.mubr.bf16.mxu1 %v512_v54 }
  0xfa   : > { %v461_v59 = vadd.f32 %v1280_v58, %v1171_v39  ;;  %v452_v60 = vpop.f32.mrb[7].mxu0  ;;  %1306 = vmatmul.mubr.bf16.vlgmr.msra.gmra.mrb[0].mxu1 %v513_v52  ;;  %v502_v62 = vmax.f32 %v458_v55, 0.0 }
  0xfb   : > { %v453_v61 = vadd.f32 %v1171_v39, %v452_v60  ;;  %v500_v0 = vmax.f32 %v450_v57, 0.0  ;;  %1393 = vmatpush3.bf16.msra.mxu1 %v1459_v34 }
  0xfc   : > { %v503_v63 = vmax.f32 %v461_v59, 0.0  ;;  %1386 = vmatprep.subr.bf16.mxu1 %v1460_v35 }
  0xfd   : > { %v501_v1 = vmax.f32 %v453_v61, 0.0 }
  0xfe   : > { %v515_v2 = vpack.c.bf16 %v503_v63, %v502_v62 }
  0xff   : > { %v514_v3 = vpack.c.bf16 %v501_v1, %v500_v0  ;;  %v1283_v4 = vpop.f32.mrb[8].mxu0  ;;  %1394 = vmatpush3.bf16.msra.mxu1 %v1460_v35 }
 0x100   : > { %v474_v5 = vadd.f32 %v1283_v4, %v1171_v39  ;;  %v465_v6 = vpop.f32.mrb[9].mxu0  ;;  %1387 = vmatprep.subr.bf16.mxu1 %v1461_v36 }
 0x101   : > { %v466_v7 = vadd.f32 %v1171_v39, %v465_v6  ;;  %v1284_v8 = vpop.f32.mrb[10].mxu0  ;;  %1309 = vmatprep.mubr.bf16.mxu1 %v514_v3 }
 0x102   : > { %v477_v9 = vadd.f32 %v1284_v8, %v1171_v39  ;;  %v468_v10 = vpop.f32.mrb[11].mxu0  ;;  %1310 = vmatmul.mubr.bf16.gmra.mrb[4].mxu1 %v515_v2  ;;  %v506_v12 = vmax.f32 %v474_v5, 0.0 }
 0x103   : > { %v469_v11 = vadd.f32 %v1171_v39, %v468_v10  ;;  %v504_v14 = vmax.f32 %v466_v7, 0.0  ;;  %1395 = vmatpush3.bf16.msra.mxu1 %v1461_v36 }
 0x104   : > { %v507_v13 = vmax.f32 %v477_v9, 0.0  ;;  %1388 = vmatprep.subr.bf16.mxu1 %v1728_v37 }
 0x105   : > { %v505_v15 = vmax.f32 %v469_v11, 0.0 }
 0x106   : > { %v517_v16 = vpack.c.bf16 %v507_v13, %v506_v12 }
 0x107   : > { %v516_v17 = vpack.c.bf16 %v505_v15, %v504_v14  ;;  %v1287_v18 = vpop.f32.mrb[12].mxu0  ;;  %1396 = vmatpush3.bf16.msra.mxu1 %v1728_v37 }
 0x108   : > { %v490_v19 = vadd.f32 %v1287_v18, %v1171_v39  ;;  %v481_v20 = vpop.f32.mrb[13].mxu0  ;;  %1389 = vmatprep.subr.bf16.mxu1 %v1734_v38 }
 0x109   : > { %v482_v21 = vadd.f32 %v1171_v39, %v481_v20  ;;  %v1288_v22 = vpop.f32.mrb[14].mxu0  ;;  %1313 = vmatprep.mubr.bf16.mxu1 %v516_v17 }
 0x10a   : > { %v493_v23 = vadd.f32 %v1288_v22, %v1171_v39  ;;  %v484_v24 = vpop.f32.mrb[15].mxu0  ;;  %1314 = vmatmul.mubr.bf16.gmra.mrb[8].mxu1 %v517_v16  ;;  %v510_v26 = vmax.f32 %v490_v19, 0.0 }
 0x10b   : > { %v485_v25 = vadd.f32 %v1171_v39, %v484_v24  ;;  %v508_v28 = vmax.f32 %v482_v21, 0.0  ;;  %v1741_v39 = vld [vmem:[%s1865_s7 + $0x28] sm:$0xff]   ;;  %1397 = vmatpush3.bf16.msra.mxu1 %v1734_v38 }
 0x10c   : > { %v511_v27 = vmax.f32 %v493_v23, 0.0  ;;  %1390 = vmatprep.subr.bf16.mxu1 %v1741_v39 }
 0x10d   : > { %v509_v29 = vmax.f32 %v485_v25, 0.0 }
 0x10e   : > { %v519_v30 = vpack.c.bf16 %v511_v27, %v510_v26 }
 0x10f   : > { %v518_v31 = vpack.c.bf16 %v509_v29, %v508_v28  ;;  %1398 = vmatpush3.bf16.msra.mxu1 %v1741_v39 }
 0x110   : > { %1391 = vmatprep.subr.bf16.mxu1 %v1465_v33 }
 0x111   : > { %1317 = vmatprep.mubr.bf16.mxu1 %v518_v31 }
 0x112   : > { %1318 = vmatmul.mubr.bf16.gmra.mrb[12].mxu1 %v519_v30 }
 0x113   : > { %1399 = vmatpush3.bf16.msra.mxu1 %v1465_v33 }
 0x1cd   : > { %v1307_v41 = vpop.f32.mrb[0].mxu1 }
 0x1ce   : > { %v634_v42 = vadd.f32 %v1307_v41, %v1749_v40  ;;  %v625_v43 = vpop.f32.mrb[1].mxu1 }
 0x1cf   : > { %v626_v44 = vadd.f32 %v1749_v40, %v625_v43  ;;  %v1308_v45 = vpop.f32.mrb[2].mxu1 }
 0x1d0   : > { %v637_v46 = vadd.f32 %v1308_v45, %v1749_v40  ;;  %v628_v47 = vpop.f32.mrb[3].mxu1  ;;  %v690_v49 = vmax.f32 %v634_v42, 0.0 }
 0x1d1   : > { %v629_v48 = vadd.f32 %v1749_v40, %v628_v47  ;;  %v688_v51 = vmax.f32 %v626_v44, 0.0 }
 0x1d2   : > { %v691_v50 = vmax.f32 %v637_v46, 0.0 }
 0x1d3   : > { %v689_v52 = vmax.f32 %v629_v48, 0.0 }
 0x1d4   : > { %v705_v53 = vpack.c.bf16 %v691_v50, %v690_v49 }
 0x1d5   : > { %v704_v54 = vpack.c.bf16 %v689_v52, %v688_v51  ;;  %v1311_v55 = vpop.f32.mrb[4].mxu1 }
 0x1d6   : > { %v650_v56 = vadd.f32 %v1311_v55, %v1749_v40  ;;  %v641_v57 = vpop.f32.mrb[5].mxu1 }
 0x1d7   : > { %v642_v58 = vadd.f32 %v1749_v40, %v641_v57  ;;  %v1312_v59 = vpop.f32.mrb[6].mxu1  ;;  %1337 = vmatprep.mubr.bf16.mxu0 %v704_v54 }
 0x1d8   : > { %v653_v60 = vadd.f32 %v1312_v59, %v1749_v40  ;;  %v644_v61 = vpop.f32.mrb[7].mxu1  ;;  %1338 = vmatmul.mubr.bf16.vlgmr.msra.gmra.mrb[16].mxu0 %v705_v53  ;;  %v694_v63 = vmax.f32 %v650_v56, 0.0 }
 0x1d9   : > { %v645_v62 = vadd.f32 %v1749_v40, %v644_v61  ;;  %1354 = vmatpush3.bf16.msra.mxu0 %v1459_v34  ;;  %v692_v1 = vmax.f32 %v642_v58, 0.0  ;;  %v1466_v34 = vld [vmem:[%s1865_s7 + $0x38] sm:$0xff]  }
 0x1da   : > { %v695_v0 = vmax.f32 %v653_v60, 0.0  ;;  %1355 = vmatprep.subr.bf16.mxu0 %v1460_v35  ;;  %1392 = vmatprep.subr.bf16.mxu1 %v1466_v34 }
 0x1db   : > { %v693_v2 = vmax.f32 %v645_v62, 0.0  ;;  %1400 = vmatpush3.bf16.msra.mxu1 %v1466_v34 }
 0x1dc   : > { %v707_v3 = vpack.c.bf16 %v695_v0, %v694_v63 }
 0x1dd   : > { %v706_v4 = vpack.c.bf16 %v693_v2, %v692_v1  ;;  %v1315_v5 = vpop.f32.mrb[8].mxu1  ;;  %1356 = vmatpush3.bf16.msra.mxu0 %v1460_v35  ;;  %v1190_v35 = vld [vmem:[%s1864_s6] ss:$0 sm:$0xff] }
 0x1de   : > { %v666_v6 = vadd.f32 %v1315_v5, %v1749_v40  ;;  %v657_v7 = vpop.f32.mrb[9].mxu1  ;;  %1357 = vmatprep.subr.bf16.mxu0 %v1461_v36 }
 0x1df   : > { %v658_v8 = vadd.f32 %v1749_v40, %v657_v7  ;;  %v1316_v9 = vpop.f32.mrb[10].mxu1  ;;  %1341 = vmatprep.mubr.bf16.mxu0 %v706_v4 }
 0x1e0   : > { %v669_v10 = vadd.f32 %v1316_v9, %v1749_v40  ;;  %v660_v11 = vpop.f32.mrb[11].mxu1  ;;  %1342 = vmatmul.mubr.bf16.gmra.mrb[20].mxu0 %v707_v3  ;;  %v698_v13 = vmax.f32 %v666_v6, 0.0 }
 0x1e1   : > { %v661_v12 = vadd.f32 %v1749_v40, %v660_v11  ;;  %1358 = vmatpush3.bf16.msra.mxu0 %v1461_v36  ;;  %v696_v15 = vmax.f32 %v658_v8, 0.0 }
 0x1e2   : > { %v699_v14 = vmax.f32 %v669_v10, 0.0  ;;  %1359 = vmatprep.subr.bf16.mxu0 %v1728_v37 }
 0x1e3   : > { %v697_v16 = vmax.f32 %v661_v12, 0.0 }
 0x1e4   : > { %v709_v17 = vpack.c.bf16 %v699_v14, %v698_v13 }
 0x1e5   : > { %v708_v18 = vpack.c.bf16 %v697_v16, %v696_v15  ;;  %v1319_v19 = vpop.f32.mrb[12].mxu1  ;;  %1360 = vmatpush3.bf16.msra.mxu0 %v1728_v37 }
 0x1e6   : > { %v682_v20 = vadd.f32 %v1319_v19, %v1749_v40  ;;  %v673_v21 = vpop.f32.mrb[13].mxu1  ;;  %1361 = vmatprep.subr.bf16.mxu0 %v1734_v38 }
 0x1e7   : > { %v674_v22 = vadd.f32 %v1749_v40, %v673_v21  ;;  %v1320_v23 = vpop.f32.mrb[14].mxu1  ;;  %1345 = vmatprep.mubr.bf16.mxu0 %v708_v18 }
 0x1e8   : > { %v685_v24 = vadd.f32 %v1320_v23, %v1749_v40  ;;  %v676_v25 = vpop.f32.mrb[15].mxu1  ;;  %1346 = vmatmul.mubr.bf16.gmra.mrb[24].mxu0 %v709_v17  ;;  %v702_v27 = vmax.f32 %v682_v20, 0.0 }
 0x1e9   : > { %v677_v26 = vadd.f32 %v1749_v40, %v676_v25  ;;  %1362 = vmatpush3.bf16.msra.mxu0 %v1734_v38  ;;  %v700_v29 = vmax.f32 %v674_v22, 0.0 }
 0x1ea   : > { %v703_v28 = vmax.f32 %v685_v24, 0.0  ;;  %1363 = vmatprep.subr.bf16.mxu0 %v1741_v39 }
 0x1eb   : > { %v701_v30 = vmax.f32 %v677_v26, 0.0 }
 0x1ec   : > { %v711_v31 = vpack.c.bf16 %v703_v28, %v702_v27  ;;  %v1199_v28 = vld [vmem:[%s1866_s8] ss:$0 sm:$0xff] }
 0x1ed   : > { %v710_v32 = vpack.c.bf16 %v701_v30, %v700_v29  ;;  %1364 = vmatpush3.bf16.msra.mxu0 %v1741_v39 }
 0x1ee   : > { %1365 = vmatprep.subr.bf16.mxu0 %v1465_v33 }
 0x1ef   : > { %1349 = vmatprep.mubr.bf16.mxu0 %v710_v32 }
 0x1f0   : > { %1350 = vmatmul.mubr.bf16.gmra.mrb[28].mxu0 %v711_v31 }
 0x1f1   : > { %1366 = vmatpush3.bf16.msra.mxu0 %v1465_v33 }
 0x1f2   : > { %1367 = vmatprep.subr.bf16.mxu0 %v1466_v34 }
 0x1f5   : > { %1368 = vmatpush3.bf16.msra.mxu0 %v1466_v34 }
 0x2ab   : > { %v1339_v36 = vpop.f32.mrb[16].mxu0 }
 0x2ac   : > { %v826_v37 = vadd.f32 %v1339_v36, %v1190_v35  ;;  %v817_v38 = vpop.f32.mrb[17].mxu0 }
 0x2ad   : > { %v818_v39 = vadd.f32 %v1190_v35, %v817_v38  ;;  %v1340_v40 = vpop.f32.mrb[18].mxu0 }
 0x2ae   : > { %v829_v41 = vadd.f32 %v1340_v40, %v1190_v35  ;;  %v820_v42 = vpop.f32.mrb[19].mxu0  ;;  %v882_v44 = vmax.f32 %v826_v37, 0.0 }
 0x2af   : > { %v821_v43 = vadd.f32 %v1190_v35, %v820_v42  ;;  %v880_v46 = vmax.f32 %v818_v39, 0.0 }
 0x2b0   : > { %v883_v45 = vmax.f32 %v829_v41, 0.0 }
 0x2b1   : > { %v881_v47 = vmax.f32 %v821_v43, 0.0 }
 0x2b2   : > { %v897_v48 = vpack.c.bf16 %v883_v45, %v882_v44 }
 0x2b3   : > { %v896_v49 = vpack.c.bf16 %v881_v47, %v880_v46  ;;  %v1343_v50 = vpop.f32.mrb[20].mxu0 }
 0x2b4   : > { %v842_v51 = vadd.f32 %v1343_v50, %v1190_v35  ;;  %v833_v52 = vpop.f32.mrb[21].mxu0 }
 0x2b5   : > { %v834_v53 = vadd.f32 %v1190_v35, %v833_v52  ;;  %v1344_v54 = vpop.f32.mrb[22].mxu0  ;;  %1369 = vmatprep.mubr.bf16.mxu0 %v896_v49 }
 0x2b6   : > { %v845_v55 = vadd.f32 %v1344_v54, %v1190_v35  ;;  %v836_v56 = vpop.f32.mrb[23].mxu0  ;;  %1370 = vmatmul.mubr.bf16.vlgmr.msra.gmra.mrb[32].mxu0 %v897_v48  ;;  %v886_v58 = vmax.f32 %v842_v51, 0.0 }
 0x2b7   : > { %v837_v57 = vadd.f32 %v1190_v35, %v836_v56  ;;  %v884_v60 = vmax.f32 %v834_v53, 0.0 }
 0x2b8   : > { %v887_v59 = vmax.f32 %v845_v55, 0.0 }
 0x2b9   : > { %v885_v61 = vmax.f32 %v837_v57, 0.0 }
 0x2ba   : > { %v899_v62 = vpack.c.bf16 %v887_v59, %v886_v58 }
 0x2bb   : > { %v898_v63 = vpack.c.bf16 %v885_v61, %v884_v60  ;;  %v1347_v0 = vpop.f32.mrb[24].mxu0 }
 0x2bc   : > { %v858_v1 = vadd.f32 %v1347_v0, %v1190_v35  ;;  %v849_v2 = vpop.f32.mrb[25].mxu0 }
 0x2bd   : > { %v850_v3 = vadd.f32 %v1190_v35, %v849_v2  ;;  %v1348_v4 = vpop.f32.mrb[26].mxu0  ;;  %1373 = vmatprep.mubr.bf16.mxu1 %v898_v63 }
 0x2be   : > { %v861_v5 = vadd.f32 %v1348_v4, %v1190_v35  ;;  %v852_v6 = vpop.f32.mrb[27].mxu0  ;;  %1374 = vmatmul.mubr.bf16.vlgmr.msra.gmra.mrb[16].mxu1 %v899_v62  ;;  %v890_v8 = vmax.f32 %v858_v1, 0.0 }
 0x2bf   : > { %v853_v7 = vadd.f32 %v1190_v35, %v852_v6  ;;  %v888_v10 = vmax.f32 %v850_v3, 0.0 }
 0x2c0   : > { %v891_v9 = vmax.f32 %v861_v5, 0.0 }
 0x2c1   : > { %v889_v11 = vmax.f32 %v853_v7, 0.0 }
 0x2c2   : > { %v901_v12 = vpack.c.bf16 %v891_v9, %v890_v8 }
 0x2c3   : > { %v900_v13 = vpack.c.bf16 %v889_v11, %v888_v10  ;;  %v1351_v14 = vpop.f32.mrb[28].mxu0 }
 0x2c4   : > { %v874_v15 = vadd.f32 %v1351_v14, %v1190_v35  ;;  %v865_v16 = vpop.f32.mrb[29].mxu0 }
 0x2c5   : > { %v866_v17 = vadd.f32 %v1190_v35, %v865_v16  ;;  %v1352_v18 = vpop.f32.mrb[30].mxu0  ;;  %1377 = vmatprep.mubr.bf16.mxu1 %v900_v13 }
 0x2c6   : > { %v877_v19 = vadd.f32 %v1352_v18, %v1190_v35  ;;  %v868_v20 = vpop.f32.mrb[31].mxu0  ;;  %1378 = vmatmul.mubr.bf16.gmra.mrb[20].mxu1 %v901_v12  ;;  %v894_v22 = vmax.f32 %v874_v15, 0.0 }
 0x2c7   : > { %v869_v21 = vadd.f32 %v1190_v35, %v868_v20  ;;  %v892_v24 = vmax.f32 %v866_v17, 0.0 }
 0x2c8   : > { %v895_v23 = vmax.f32 %v877_v19, 0.0 }
 0x2c9   : > { %v893_v25 = vmax.f32 %v869_v21, 0.0 }
 0x2ca   : > { %v903_v26 = vpack.c.bf16 %v895_v23, %v894_v22 }
 0x2cb   : > { %v902_v27 = vpack.c.bf16 %v893_v25, %v892_v24 }
 0x2cd   : > { %1381 = vmatprep.mubr.bf16.mxu1 %v902_v27 }
 0x2ce   : > { %1382 = vmatmul.mubr.bf16.gmra.mrb[24].mxu1 %v903_v26 }
 0x389   : > { %v1371_v29 = vpop.f32.mrb[32].mxu0 }
 0x38a   : > { %v1018_v30 = vadd.f32 %v1371_v29, %v1199_v28  ;;  %v1009_v31 = vpop.f32.mrb[33].mxu0 }
 0x38b   : > { %v1010_v32 = vadd.f32 %v1199_v28, %v1009_v31  ;;  %v1372_v33 = vpop.f32.mrb[34].mxu0 }
 0x38c   : > { %1074 = vst [vmem:[%s1788_s26 + $0x10] sm:$0xff] %v1018_v30  ;;  %v1021_v34 = vadd.f32 %v1372_v33, %v1199_v28  ;;  %v1012_v35 = vpop.f32.mrb[35].mxu0 }
 0x38d   : > { %1072 = vst [vmem:[%s1788_s26] sm:$0xff] %v1010_v32  ;;  %v1013_v36 = vadd.f32 %v1199_v28, %v1012_v35 }
 0x38e   : > { %1075 = vst [vmem:[%s1788_s26 + $0x18] sm:$0xff] %v1021_v34 }
 0x38f   : > { %1073 = vst [vmem:[%s1788_s26 + $0x8] sm:$0xff] %v1013_v36 }
 0x391   : > { %v1375_v37 = vpop.f32.mrb[16].mxu1 }
 0x392   : > { %v1034_v38 = vadd.f32 %v1375_v37, %v1199_v28  ;;  %v1025_v39 = vpop.f32.mrb[17].mxu1 }
 0x393   : > { %v1026_v40 = vadd.f32 %v1199_v28, %v1025_v39  ;;  %v1376_v41 = vpop.f32.mrb[18].mxu1 }
 0x394   : > { %1078 = vst [vmem:[%s1788_s26 + $0x30] sm:$0xff] %v1034_v38  ;;  %v1037_v42 = vadd.f32 %v1376_v41, %v1199_v28  ;;  %v1028_v43 = vpop.f32.mrb[19].mxu1 }
 0x395   : > { %1076 = vst [vmem:[%s1788_s26 + $0x20] sm:$0xff] %v1026_v40  ;;  %v1029_v44 = vadd.f32 %v1199_v28, %v1028_v43 }
 0x396   : > { %1079 = vst [vmem:[%s1788_s26 + $0x38] sm:$0xff] %v1037_v42 }
 0x397   : > { %1077 = vst [vmem:[%s1788_s26 + $0x28] sm:$0xff] %v1029_v44 }
 0x399   : > { %v1379_v45 = vpop.f32.mrb[20].mxu1 }
 0x39a   : > { %v1050_v46 = vadd.f32 %v1379_v45, %v1199_v28  ;;  %v1041_v47 = vpop.f32.mrb[21].mxu1 }
 0x39b   : > { %v1042_v48 = vadd.f32 %v1199_v28, %v1041_v47  ;;  %v1380_v49 = vpop.f32.mrb[22].mxu1 }
 0x39c   : > { %1082 = vst [vmem:[%s1788_s26 + $0x50] sm:$0xff] %v1050_v46  ;;  %v1053_v50 = vadd.f32 %v1380_v49, %v1199_v28  ;;  %v1044_v51 = vpop.f32.mrb[23].mxu1 }
 0x39d   : > { %1080 = vst [vmem:[%s1788_s26 + $0x40] sm:$0xff] %v1042_v48  ;;  %v1045_v52 = vadd.f32 %v1199_v28, %v1044_v51 }
 0x39e   : > { %1083 = vst [vmem:[%s1788_s26 + $0x58] sm:$0xff] %v1053_v50 }
 0x39f   : > { %1081 = vst [vmem:[%s1788_s26 + $0x48] sm:$0xff] %v1045_v52 }
 0x3a1   : > { %v1383_v53 = vpop.f32.mrb[24].mxu1 }
 0x3a2   : > { %v1066_v54 = vadd.f32 %v1383_v53, %v1199_v28  ;;  %v1057_v55 = vpop.f32.mrb[25].mxu1 }
 0x3a3   : > { %v1058_v56 = vadd.f32 %v1199_v28, %v1057_v55  ;;  %v1384_v57 = vpop.f32.mrb[26].mxu1 }
 0x3a4   : > { %1086 = vst [vmem:[%s1788_s26 + $0x70] sm:$0xff] %v1066_v54  ;;  %v1069_v58 = vadd.f32 %v1384_v57, %v1199_v28  ;;  %v1060_v59 = vpop.f32.mrb[27].mxu1 }
 0x3a5   : > { %1084 = vst [vmem:[%s1788_s26 + $0x60] sm:$0xff] %v1058_v56  ;;  %v1061_v60 = vadd.f32 %v1199_v28, %v1060_v59 }
 0x3a6   : > { %1087 = vst [vmem:[%s1788_s26 + $0x78] sm:$0xff] %v1069_v58 }
 0x3a7   : > { %1085 = vst [vmem:[%s1788_s26 + $0x68] sm:$0xff] %v1061_v60 }
 0x3a8   : > { %1480 = shalt.err (!%p1477_p3)
}
 0x3a9   : > { %s1481_s16 = scalar_lea.hbm %s1808_s17, 2048  ;;  %s1485_s27 = scalar_lea.hbm %s1867_s9, 4096 }
 0x3aa   : > { %p1482_p4 = scmp.ne.s32.totalorder %s1808_s17, %s1481_s16  ;;  %p1486_p9 = scmp.lt.u32.totalorder %s1808_s17, %s1867_s9 }
 0x3ab   : > { %p1487_p10 = scmp.lt.u32.totalorder %s1485_s27, %s1481_s16  ;;  %p1489_p12 = scmp.lt.u32.totalorder %s1481_s16, %s1808_s17 }
 0x3ac   : > { %p1483_p7 = pnand %p1482_p4, %p1622_p5 }
 0x3ad   : > { %p1488_p11 = por %p1487_p10, %p1486_p9 }
 0x3ae   : > { %p1484_p8 = pneg %p1483_p7 }
 0x3af   : > { %p1490_p13 = por %p1489_p12, %p1488_p11 }
 0x3b1   : > { %p1491_p0 = pnand %p1490_p13, %p1484_p8 }
 0x3b3   : > { %1494 = shalt.err (!%p1491_p0)
}
 0x3b4   : > { %s1532_s21 = smov 128   ;;  %s1533_s22 = smov 8  }
 0x3b5   : > { %1401 = dma.vmem_to_hbm [thread:$0]  (%p1622_p5), %s1810_s28, 2048, %s1808_s17, %s1817_s13, %s1532_s21, %s1532_s21, %s1533_s22  }
 0x3b6 PF: > { %p1407_p1 = scmp.ge.s32.totalorder %s1529_s12, 2  ;;  %s1117_s23 = sand.u32 1, %s1517_s30  }
 0x3b7   : > { %s1118_s24 = scalar_lea.sflag [#allocation3], %s1117_s23 }
 0x3b8   : > { %p1404_p2 = pnand %p1407_p1, %p1626_p6 }
 0x3ba   : > { %1512 = dma.done.wait (!%p1404_p2), %s1118_s24, 2048  }
 0x3bb   : > { %1514 = vsyncadd (!%p1404_p2), %s1118_s24, 4294965248  ;;  %p19_p3 = scmp.ge.s32.totalorder %s1609_s15, 4   ;;  %s1870_s30 = smov %s1521_s10 }
 0x3bc   : > { %s1871_s10 = smov %s1525_s11  ;;  %s1872_s11 = smov %s1620_s18 }
 0x3bd   : > { %s1873_s12 = smov %s1609_s15  ;;  %21 = sbr.rel (!%p19_p3) target bundleno = 3 (0x3), region = 91 }
 0x3c4   :  { %1123 = vsyncpa [#allocation3], 1 }
 0x3c5   :  { %1125 = vsyncpa [#allocation3 + $0x1], 1 }

</bundles_post_ra>
